<compile_context>
chip_gen: v7x
topology: tpu7x:2x2x1
jax: 0.10.0
libtpu: 0.0.40
codegen_flags: <defaults>
</compile_context>

<pallas_src>
import functools

import jax
import jax.numpy as jnp
from jax import lax
from jax.experimental import pallas as pl
from jax.experimental.pallas import tpu as pltpu

INCEPTION = ("skip_connect", "avg_pool_3", "max_pool_3", "conv_3")
NUM_OPS = len(INCEPTION)
EPS = 1e-5
NEG = -1e30          # plain Python float (reference only)


def block_kernel(x_ref,    # (C_in, TN)  bf16, TN = columns per grid step
                 w1_ref,   # (CB, C_in)  bf16, bn1 scale folded into rows
                 w3_ref,   # (CB, 3*CB)  bf16, block-diagonal taps, arch_w*BN scale folded
                 w2_ref,   # (C_out, CB) bf16, bn2 scale folded into rows
                 cst_ref,  # (CB, 6) f32: [bn1_shift|k_s|k_edge|k_max|shift_t|bn2_shift]
                 o_ref,    # (C_out, TN) f32
                 *, seq_len):
    cst = cst_ref[...]
    bn1_b, k_s, k_edge, k_max, shift_t, bn2_b = (cst[:, j:j + 1] for j in range(6))

    # conv_list[i] for all 4 branches fused: 1x1 conv -> BN (scale folded) -> ReLU.
    s = jnp.dot(w1_ref[...], x_ref[...], preferred_element_type=jnp.float32)
    s = jnp.maximum(s + bn1_b, 0.0)
    tn = s.shape[1]

    # Sequence-boundary masks from a tiny (1, TN) lane iota; tiles are
    # sequence-aligned so within-tile column position == position in sequence.
    pos = lax.broadcasted_iota(jnp.int32, (1, tn), 1) % seq_len
    not_first = pos != 0
    not_last = pos != seq_len - 1

    # One-lane shifts along the length axis on the XLU (no slice+concat copies).
    sd0 = jnp.where(not_first, pltpu.roll(s, 1, axis=1), 0.0)       # s[:, l-1]
    su0 = jnp.where(not_last, pltpu.roll(s, tn - 1, axis=1), 0.0)   # s[:, l+1]

    # avg_pool_3 needs sd0 + s + su0; the s coefficient is folded into k_s.
    edge = sd0 + su0
    # max_pool_3: s >= 0 post-ReLU, so zero padding == -inf padding.
    mx = jnp.maximum(jnp.maximum(sd0, s), su0)
    # conv_3 = ReLU -> Conv1d(k=3, pad=1) -> BN.  s >= 0 already, so the ReLU
    # is a no-op; all branches in one matmul against the block-diagonal weight.
    # TODO(synk): for CB >= 128 per branch, split into 3 accumulated matmuls /
    # per-branch matmuls instead of the dense block-diagonal form.
    taps = jnp.concatenate([sd0, s, su0], axis=0).astype(jnp.bfloat16)
    c3 = jnp.dot(w3_ref[...], taps, preferred_element_type=jnp.float32)

    # Branch.forward: sum_j arch_w[j] * op_j(s); arch weights, BN scales, the
    # 1/3 avg factor and all shifts are folded host-side into k_* / shift_t.
    branch = k_s * s + k_edge * edge + k_max * mx + c3 + shift_t

    # Final 1x1 conv over the channel concat -> BN (scale folded) -> ReLU.
    out = jnp.dot(w2_ref[...], branch.astype(jnp.bfloat16),
                  preferred_element_type=jnp.float32)
    o_ref[...] = jnp.maximum(out + bn2_b, 0.0).astype(o_ref.dtype)


def init_params(key, C_in, C_out, reduction=False):
    assert not reduction, "reduction=True (stride 2) path not implemented"
    nb = 4
    assert C_out % nb == 0
    c_br = C_out // nb
    ks = jax.random.split(key, 9)

    def nrm(k, shape, scale=0.2):
        return (scale * jax.random.normal(k, shape)).astype(jnp.float32)

    def bn(k, shape, affine=True):
        k1, k2, k3, k4 = jax.random.split(k, 4)
        gamma = (1.0 + 0.1 * jax.random.normal(k1, shape)) if affine else jnp.ones(shape)
        beta = (0.1 * jax.random.normal(k2, shape)) if affine else jnp.zeros(shape)
        mean = 0.1 * jax.random.normal(k3, shape)
        var = 1.0 + 0.1 * jax.random.uniform(k4, shape)
        scale = gamma / jnp.sqrt(var + EPS)
        shift = beta - mean * scale
        return scale.astype(jnp.float32), shift.astype(jnp.float32)

    bn1_scale, bn1_shift = bn(ks[3], (nb, c_br))                  # affine BN after 1x1 conv
    c3_scale, c3_shift = bn(ks[4], (nb, c_br), affine=False)      # OPS[...](C, stride, False)
    avg_scale, avg_shift = bn(ks[5], (nb, c_br), affine=False)
    max_scale, max_shift = bn(ks[6], (nb, c_br), affine=False)
    bn2_scale, bn2_shift = bn(ks[7], (1, C_out))

    return dict(
        w1=nrm(ks[0], (nb, C_in, c_br)),          # (C_in, c_br) per branch
        w3=nrm(ks[1], (nb, 3, c_br, c_br)),       # w3[i, k, ci, co]; k: dn/center/up
        w2=nrm(ks[2], (nb * c_br, C_out)),
        bn1_scale=bn1_scale, bn1_shift=bn1_shift,
        c3_scale=c3_scale, c3_shift=c3_shift,
        avg_scale=avg_scale, avg_shift=avg_shift,
        max_scale=max_scale, max_shift=max_shift,
        bn2_scale=bn2_scale, bn2_shift=bn2_shift,
        arch_w=jax.nn.softmax(jax.random.normal(ks[8], (nb, NUM_OPS)), -1)
               .astype(jnp.float32),
    )


def pack_params(p):
    """Host-side folding/packing of module params into kernel-ready arrays."""
    nb, c_in, c_br = p["w1"].shape
    cb = nb * c_br
    aw = p["arch_w"]                                  # (nb, 4): skip, avg, max, conv3

    def col(a):                                       # (nb, c_br) -> (cb, 1)
        return a.reshape(cb, 1).astype(jnp.float32)

    def arch(j):                                      # arch weight j broadcast over c_br
        return jnp.repeat(aw[:, j], c_br).reshape(cb, 1).astype(jnp.float32)

    # Weights, channel-major (output channels on sublanes), BN scales folded in.
    w1 = jnp.transpose(p["w1"], (0, 2, 1)).reshape(cb, c_in)          # (CB, C_in)
    w1 = (w1 * col(p["bn1_scale"])).astype(jnp.bfloat16)

    # Block-diagonal k=3 conv weight; column blocks = [dn taps | center | up taps].
    w3 = jnp.zeros((cb, 3 * cb), jnp.float32)
    for i in range(nb):
        rows = slice(i * c_br, (i + 1) * c_br)
        for k in range(3):
            w3 = w3.at[rows, k * cb + i * c_br:k * cb + (i + 1) * c_br].set(
                p["w3"][i, k].T)
    w3 = (w3 * (arch(3) * col(p["c3_scale"]))).astype(jnp.bfloat16)   # (CB, 3CB)

    w2 = (p["w2"].T * p["bn2_scale"].reshape(-1, 1)).astype(jnp.bfloat16)  # (C_out, CB)

    # Per-channel constants packed into a single (CB, 6) array (one DMA).
    k_edge = arch(1) * col(p["avg_scale"]) / 3.0       # avg arch_w * BN scale * 1/3
    k_s = arch(0) + k_edge                             # skip + s-term of the avg pool
    k_max = arch(2) * col(p["max_scale"])
    shift_t = (arch(1) * col(p["avg_shift"]) + arch(2) * col(p["max_shift"])
               + arch(3) * col(p["c3_shift"]))
    cst = jnp.concatenate(
        [col(p["bn1_shift"]), k_s, k_edge, k_max, shift_t,
         p["bn2_shift"].reshape(-1, 1)], axis=1).astype(jnp.float32)

    return dict(w1=w1, w3=w3, w2=w2, cst=cst)


def _pick_tile_cols(batch, seq_len, target=1024):
    """Columns (positions) per grid step.

    Must be a multiple of seq_len (rolls/masks assume sequence-aligned tiles)
    and of 128 (lane tiling), near `target` so BlockSpec double-buffering can
    overlap DMA with compute, with >= 2 grid steps whenever possible so the
    'parallel' grid axis can shard across v7x's two TensorCores.
    """
    total = batch * seq_len
    step = seq_len
    while step % 128:                      # smallest seq-aligned, lane-aligned tile
        step += seq_len
        if step >= total:
            return total                   # fall back: one full block (always legal)
    tile = min(total, max(step, (target // step) * step))
    if tile == total and total >= 2 * step:
        tile = (total // (2 * step)) * step
    return tile


@jax.jit
def block_forward(x_ncw, pk):
    """x_ncw: (B, C_in, L) f32 (PyTorch NCW layout). Returns (B, C_out, L) f32."""
    B, C_in, L = x_ncw.shape
    cb = pk["w1"].shape[0]
    C_out = pk["w2"].shape[0]

    # Channels-major slab: channels on sublanes, batch*length on lanes.
    x_cm = jnp.transpose(x_ncw, (1, 0, 2)).reshape(C_in, B * L).astype(jnp.bfloat16)

    tn = _pick_tile_cols(B, L)
    grid = (pl.cdiv(B * L, tn),)

    def const(a):                           # whole (small) array, same block every step
        return pl.BlockSpec(a.shape, lambda b: (0, 0))

    kernel = functools.partial(block_kernel, seq_len=L)
    out_cm = pl.pallas_call(
        kernel,
        out_shape=jax.ShapeDtypeStruct((C_out, B * L), jnp.float32),
        grid=grid,
        in_specs=[
            pl.BlockSpec((C_in, tn), lambda b: (0, b)),
            const(pk["w1"]), const(pk["w3"]), const(pk["w2"]), const(pk["cst"]),
        ],
        out_specs=pl.BlockSpec((C_out, tn), lambda b: (0, b)),
        compiler_params=pltpu.CompilerParams(
            # Independent column tiles -> shard across the 2 TCs on v7x.
            dimension_semantics=("parallel",),
            # Above v5e's 16 MiB scoped default, comfortably inside v7x's 64 MiB
            # physical VMEM (per-tile footprint here is well under 4 MiB).
            vmem_limit_bytes=32 * 1024 * 1024,
        ),
    )(x_cm, pk["w1"], pk["w3"], pk["w2"], pk["cst"])

    return jnp.transpose(out_cm.reshape(C_out, B, L), (1, 0, 2))   # (B, C_out, L)


def block_reference(x_ncw, p):
    """Pure-JAX reference of the module forward.

    Mirrors the kernel's bf16 matmul-input casts and the (exact, f32) folding
    of BN scales into weights so the comparison isolates real errors.
    """
    x = jnp.transpose(x_ncw, (0, 2, 1)).astype(jnp.float32)   # (B, L, C_in)
    nb, _, c_br = p["w1"].shape

    def b16(a):
        return a.astype(jnp.bfloat16).astype(jnp.float32)

    def sh(a, d, fill):
        pad = jnp.full_like(a[:, :1], fill)
        if d == 1:
            return jnp.concatenate([pad, a[:, :-1]], axis=1)
        return jnp.concatenate([a[:, 1:], pad], axis=1)

    xb = b16(x)
    branches = []
    for i in range(nb):
        w = p["arch_w"][i]
        w1 = b16(p["w1"][i] * p["bn1_scale"][i][None, :])
        s = jax.nn.relu(jnp.einsum("blc,cd->bld", xb, w1) + p["bn1_shift"][i])
        avg = (sh(s, 1, 0.0) + s + sh(s, -1, 0.0)) / 3.0
        avg = avg * p["avg_scale"][i] + p["avg_shift"][i]
        mx = jnp.maximum(jnp.maximum(sh(s, 1, NEG), s), sh(s, -1, NEG))
        mx = mx * p["max_scale"][i] + p["max_shift"][i]
        r = jax.nn.relu(s)
        w3 = b16(p["w3"][i] * (w[3] * p["c3_scale"][i])[None, None, :])
        c3 = (jnp.einsum("blc,cd->bld", b16(sh(r, 1, 0.0)), w3[0])
              + jnp.einsum("blc,cd->bld", b16(r), w3[1])
              + jnp.einsum("blc,cd->bld", b16(sh(r, -1, 0.0)), w3[2]))
        c3 = c3 + w[3] * p["c3_shift"][i]
        branches.append(w[0] * s + w[1] * avg + w[2] * mx + c3)
    cat = jnp.concatenate(branches, axis=-1)
    w2 = b16(p["w2"] * p["bn2_scale"][0][None, :])
    out = jax.nn.relu(jnp.einsum("blc,cd->bld", b16(cat), w2) + p["bn2_shift"][0])
    return jnp.transpose(out, (0, 2, 1))


if __name__ == "__main__":
    key = jax.random.PRNGKey(0)
    kx, kp = jax.random.split(key)
    # Block(C_in=32, C_out=64, reduction=False); 8 sequences of length 64 so the
    # grid has 2 sequence-aligned, lane-aligned column tiles.
    B, C_in, C_out, L = 8, 32, 64, 64
    x = jax.random.normal(kx, (B, C_in, L), jnp.float32)   # PyTorch NCW input
    params = init_params(kp, C_in, C_out, reduction=False)
    packed = pack_params(params)

    out = jax.block_until_ready(block_forward(x, packed))
    ref = block_reference(x, params)

    assert out.shape == (B, C_out, L)
    err = float(jnp.max(jnp.abs(out - ref)))
    assert err < 2e-2, f"max abs err {err}"   # bf16 MXU inputs -> loosened tolerance
    print("KERNEL_OK")
</pallas_src>

<mosaic_0001>
module attributes {stable_mosaic.version = 11 : i64} {
  func.func @block_kernel(%arg0: i32, %arg1: memref<32x256xbf16, #tpu.memory_space<vmem>>, %arg2: memref<64x32xbf16, #tpu.memory_space<vmem>>, %arg3: memref<64x192xbf16, #tpu.memory_space<vmem>>, %arg4: memref<64x64xbf16, #tpu.memory_space<vmem>>, %arg5: memref<64x6xf32, #tpu.memory_space<vmem>>, %arg6: memref<64x256xf32, #tpu.memory_space<vmem>>) attributes {dimension_semantics = [#tpu.dimension_semantics<parallel>], iteration_bounds = array<i64: 2>, scalar_prefetch = 0 : i64, scratch_operands = 0 : i64, tpu.core_type = #tpu.core_type<tc>, window_params = [{transform_indices = @transform_0, window_bounds = array<i64: 32, 256>}, {pipeline_mode = #tpu.pipeline_mode<synchronous>, transform_indices = @transform_1, window_bounds = array<i64: 64, 32>}, {pipeline_mode = #tpu.pipeline_mode<synchronous>, transform_indices = @transform_2, window_bounds = array<i64: 64, 192>}, {pipeline_mode = #tpu.pipeline_mode<synchronous>, transform_indices = @transform_3, window_bounds = array<i64: 64, 64>}, {pipeline_mode = #tpu.pipeline_mode<synchronous>, transform_indices = @transform_4, window_bounds = array<i64: 64, 6>}, {transform_indices = @transform_5, window_bounds = array<i64: 64, 256>}]} {
    %c0 = arith.constant 0 : index
    %c0_0 = arith.constant 0 : index
    %0 = vector.load %arg5[%c0, %c0_0] : memref<64x6xf32, #tpu.memory_space<vmem>>, vector<64x6xf32>
    %1 = vector.extract_strided_slice %0 {offsets = [0, 0], sizes = [64, 1], strides = [1, 1]} : vector<64x6xf32> to vector<64x1xf32>
    %2 = vector.extract_strided_slice %0 {offsets = [0, 1], sizes = [64, 1], strides = [1, 1]} : vector<64x6xf32> to vector<64x1xf32>
    %3 = vector.extract_strided_slice %0 {offsets = [0, 2], sizes = [64, 1], strides = [1, 1]} : vector<64x6xf32> to vector<64x1xf32>
    %4 = vector.extract_strided_slice %0 {offsets = [0, 3], sizes = [64, 1], strides = [1, 1]} : vector<64x6xf32> to vector<64x1xf32>
    %5 = vector.extract_strided_slice %0 {offsets = [0, 4], sizes = [64, 1], strides = [1, 1]} : vector<64x6xf32> to vector<64x1xf32>
    %6 = vector.extract_strided_slice %0 {offsets = [0, 5], sizes = [64, 1], strides = [1, 1]} : vector<64x6xf32> to vector<64x1xf32>
    %c0_1 = arith.constant 0 : index
    %c0_2 = arith.constant 0 : index
    %7 = vector.load %arg2[%c0_1, %c0_2] : memref<64x32xbf16, #tpu.memory_space<vmem>>, vector<64x32xbf16>
    %c0_3 = arith.constant 0 : index
    %c0_4 = arith.constant 0 : index
    %8 = vector.load %arg1[%c0_3, %c0_4] : memref<32x256xbf16, #tpu.memory_space<vmem>>, vector<32x256xbf16>
    %cst = arith.constant dense<0.000000e+00> : vector<64x256xf32>
    %9 = tpu.matmul %7, %8, %cst {dimension_numbers = #tpu.dot_dimension_numbers<[1], [0], [0], [1], [0, 0, 1, 1], [], []>} : vector<64x32xbf16>, vector<32x256xbf16>, vector<64x256xf32> -> vector<64x256xf32>
    %10 = vector.broadcast %1 : vector<64x1xf32> to vector<64x256xf32>
    %11 = arith.addf %9, %10 : vector<64x256xf32>
    %cst_5 = arith.constant 0.000000e+00 : f32
    %12 = vector.broadcast %cst_5 : f32 to vector<64x256xf32>
    %13 = arith.maximumf %11, %12 : vector<64x256xf32>
    %14 = tpu.iota {dimensions = array<i32: 1>} : vector<1x256xi32>
    %c64_i32 = arith.constant 64 : i32
    %c0_i32 = arith.constant 0 : i32
    %15 = arith.cmpi eq, %c64_i32, %c0_i32 : i32
    %c1_i32 = arith.constant 1 : i32
    %16 = arith.select %15, %c1_i32, %c64_i32 : i32
    %17 = vector.broadcast %16 : i32 to vector<1x256xi32>
    %18 = arith.remsi %14, %17 : vector<1x256xi32>
    %c0_i32_6 = arith.constant 0 : i32
    %19 = vector.broadcast %c0_i32_6 : i32 to vector<1x256xi32>
    %20 = arith.cmpi ne, %18, %19 : vector<1x256xi32>
    %c0_i32_7 = arith.constant 0 : i32
    %21 = vector.broadcast %c0_i32_7 : i32 to vector<1x256xi32>
    %22 = arith.cmpi slt, %18, %21 : vector<1x256xi32>
    %c0_i32_8 = arith.constant 0 : i32
    %23 = arith.cmpi slt, %16, %c0_i32_8 : i32
    %24 = vector.broadcast %23 : i1 to vector<1x256xi1>
    %25 = vector.broadcast %24 : vector<1x256xi1> to vector<1x256xi1>
    %26 = arith.xori %22, %25 : vector<1x256xi1>
    %27 = arith.andi %26, %20 : vector<1x256xi1>
    %28 = vector.broadcast %16 : i32 to vector<1x256xi32>
    %29 = arith.addi %18, %28 : vector<1x256xi32>
    %30 = arith.select %27, %29, %18 : vector<1x256xi1>, vector<1x256xi32>
    %c0_i32_9 = arith.constant 0 : i32
    %31 = vector.broadcast %c0_i32_9 : i32 to vector<1x256xi32>
    %32 = arith.cmpi ne, %30, %31 : vector<1x256xi32>
    %c63_i32 = arith.constant 63 : i32
    %33 = vector.broadcast %c63_i32 : i32 to vector<1x256xi32>
    %34 = arith.cmpi ne, %30, %33 : vector<1x256xi32>
    %c1_i32_10 = arith.constant 1 : i32
    %35 = tpu.dynamic_rotate %13 by %c1_i32_10 dim 1 : vector<64x256xf32>, i32 -> vector<64x256xf32>
    %cst_11 = arith.constant 0.000000e+00 : f32
    %36 = vector.shape_cast %32 : vector<1x256xi1> to vector<1x256xi1>
    %37 = vector.broadcast %36 : vector<1x256xi1> to vector<64x256xi1>
    %38 = vector.broadcast %cst_11 : f32 to vector<64x256xf32>
    %39 = arith.select %37, %35, %38 : vector<64x256xi1>, vector<64x256xf32>
    %c255_i32 = arith.constant 255 : i32
    %40 = tpu.dynamic_rotate %13 by %c255_i32 dim 1 : vector<64x256xf32>, i32 -> vector<64x256xf32>
    %cst_12 = arith.constant 0.000000e+00 : f32
    %41 = vector.shape_cast %34 : vector<1x256xi1> to vector<1x256xi1>
    %42 = vector.broadcast %41 : vector<1x256xi1> to vector<64x256xi1>
    %43 = vector.broadcast %cst_12 : f32 to vector<64x256xf32>
    %44 = arith.select %42, %40, %43 : vector<64x256xi1>, vector<64x256xf32>
    %45 = arith.addf %39, %44 : vector<64x256xf32>
    %46 = arith.maximumf %39, %13 : vector<64x256xf32>
    %47 = arith.maximumf %46, %44 : vector<64x256xf32>
    %48 = tpu.concatenate %39, %13, %44 in 0 : vector<64x256xf32>, vector<64x256xf32>, vector<64x256xf32> -> vector<192x256xf32>
    %49 = arith.truncf %48 : vector<192x256xf32> to vector<192x256xbf16>
    %c0_13 = arith.constant 0 : index
    %c0_14 = arith.constant 0 : index
    %50 = vector.load %arg3[%c0_13, %c0_14] : memref<64x192xbf16, #tpu.memory_space<vmem>>, vector<64x192xbf16>
    %cst_15 = arith.constant dense<0.000000e+00> : vector<64x256xf32>
    %51 = tpu.matmul %50, %49, %cst_15 {dimension_numbers = #tpu.dot_dimension_numbers<[1], [0], [0], [1], [0, 0, 1, 1], [], []>} : vector<64x192xbf16>, vector<192x256xbf16>, vector<64x256xf32> -> vector<64x256xf32>
    %52 = vector.broadcast %2 : vector<64x1xf32> to vector<64x256xf32>
    %53 = arith.mulf %52, %13 : vector<64x256xf32>
    %54 = vector.broadcast %3 : vector<64x1xf32> to vector<64x256xf32>
    %55 = arith.mulf %54, %45 : vector<64x256xf32>
    %56 = arith.addf %53, %55 : vector<64x256xf32>
    %57 = vector.broadcast %4 : vector<64x1xf32> to vector<64x256xf32>
    %58 = arith.mulf %57, %47 : vector<64x256xf32>
    %59 = arith.addf %56, %58 : vector<64x256xf32>
    %60 = arith.addf %59, %51 : vector<64x256xf32>
    %61 = vector.broadcast %5 : vector<64x1xf32> to vector<64x256xf32>
    %62 = arith.addf %60, %61 : vector<64x256xf32>
    %c0_16 = arith.constant 0 : index
    %c0_17 = arith.constant 0 : index
    %63 = vector.load %arg4[%c0_16, %c0_17] : memref<64x64xbf16, #tpu.memory_space<vmem>>, vector<64x64xbf16>
    %64 = arith.truncf %62 : vector<64x256xf32> to vector<64x256xbf16>
    %cst_18 = arith.constant dense<0.000000e+00> : vector<64x256xf32>
    %65 = tpu.matmul %63, %64, %cst_18 {dimension_numbers = #tpu.dot_dimension_numbers<[1], [0], [0], [1], [0, 0, 1, 1], [], []>} : vector<64x64xbf16>, vector<64x256xbf16>, vector<64x256xf32> -> vector<64x256xf32>
    %66 = vector.broadcast %6 : vector<64x1xf32> to vector<64x256xf32>
    %67 = arith.addf %65, %66 : vector<64x256xf32>
    %cst_19 = arith.constant 0.000000e+00 : f32
    %68 = vector.broadcast %cst_19 : f32 to vector<64x256xf32>
    %69 = arith.maximumf %67, %68 : vector<64x256xf32>
    %c0_20 = arith.constant 0 : index
    %c0_21 = arith.constant 0 : index
    %70 = vector.load %arg6[%c0_20, %c0_21] : memref<64x256xf32, #tpu.memory_space<vmem>>, vector<64x256xf32>
    tpu.vector_store %arg6[%c0_20, %c0_21], %69 {strides = array<i32>} : memref<64x256xf32, #tpu.memory_space<vmem>>, vector<64x256xf32>,
    return
  }
  func.func @transform_0(%arg0: i32) -> (i32, i32) {
    %c0_i32 = arith.constant 0 : i32
    %c0_i32_0 = arith.constant 0 : i32
    return %c0_i32, %arg0 : i32, i32
  }
  func.func @transform_1(%arg0: i32) -> (i32, i32) {
    %c0_i32 = arith.constant 0 : i32
    %c0_i32_0 = arith.constant 0 : i32
    %c0_i32_1 = arith.constant 0 : i32
    return %c0_i32, %c0_i32_0 : i32, i32
  }
  func.func @transform_2(%arg0: i32) -> (i32, i32) {
    %c0_i32 = arith.constant 0 : i32
    %c0_i32_0 = arith.constant 0 : i32
    %c0_i32_1 = arith.constant 0 : i32
    return %c0_i32, %c0_i32_0 : i32, i32
  }
  func.func @transform_3(%arg0: i32) -> (i32, i32) {
    %c0_i32 = arith.constant 0 : i32
    %c0_i32_0 = arith.constant 0 : i32
    %c0_i32_1 = arith.constant 0 : i32
    return %c0_i32, %c0_i32_0 : i32, i32
  }
  func.func @transform_4(%arg0: i32) -> (i32, i32) {
    %c0_i32 = arith.constant 0 : i32
    %c0_i32_0 = arith.constant 0 : i32
    %c0_i32_1 = arith.constant 0 : i32
    return %c0_i32, %c0_i32_0 : i32, i32
  }
  func.func @transform_5(%arg0: i32) -> (i32, i32) {
    %c0_i32 = arith.constant 0 : i32
    %c0_i32_0 = arith.constant 0 : i32
    return %c0_i32, %arg0 : i32, i32
  }
}

</mosaic_0001>

<bundles_post_ra>
// kernel: block_forward.1
= control target key start
LH: loop header
LB: loop body
LE: loop exit
PB: predicated region body
PF: predicated region fallthrough
CT: control target
= control target key end

     0   :  { %s1627_s18 = smov 0   ;;  %s1629_s19 = smov 0   ;;  %s2500_s0 = inlined_call_operand.vmem [shape: bf16[32,512], index: 0, kind: input, shape index: {}]   ;;  %s2501_s1 = inlined_call_operand.vmem [shape: bf16[64,32], index: 1, kind: input, shape index: {}]   ;;  %s2502_s2 = inlined_call_operand.vmem [shape: bf16[64,192], index: 2, kind: input, shape index: {}]   ;;  %s2503_s3 = inlined_call_operand.vmem [shape: bf16[64,64], index: 3, kind: input, shape index: {}]   ;;  %s2504_s4 = inlined_call_operand.vmem [shape: f32[64,6], index: 4, kind: input, shape index: {}]   ;;  %s2505_s5 = inlined_call_operand.vmem [shape: f32[64,512], index: 5, kind: output, shape index: {}]  }
   0x1   :  { %s1631_s20 = smov 0  }
   0x2 LB: > { %s1380_s21 = sadd.s32 4294967295, %s1587_s20   ;;  %s1644_s22 = sadd.s32 1, %s1587_s20   ;;  %s1587_s20 = sphi %s1631_s20, %s2554_s20   ;;  %s1583_s19 = sphi %s1629_s19, %s2553_s19   ;;  %s1579_s18 = sphi %s1627_s18, %s2552_s18  }
   0x3   : > { %s19_s23 = ssub.s32 %s1587_s20, %s1644_s22  ;;  %s22_s24 = sadd.s32 1, %s1583_s19 }
   0x4   : > { %p20_p0 = scmp.eq.s32.totalorder %s19_s23, 0  ;;  %p29_p1 = scmp.ne.s32.totalorder %s1583_s19, %s1579_s18 }
   0x5   : > { %p30_p2 = scmp.eq.s32.totalorder %s1587_s20, 0  ;;  %p143_p3 = scmp.eq.s32.totalorder %s1380_s21, 1 }
   0x6   : > { %s1655_s25 = scalar_select %p20_p0, %s1583_s19, %s22_s24  }
   0x7   : > { %p31_p4 = por %p30_p2, %p29_p1  ;;  %p1657_p5 = por %p143_p3, %p29_p1 }
   0x8   : > { %p1383_p6 = scmp.ge.s32.totalorder %s1587_s20, 2 }
   0xa   : > { %177 = sbr.rel (%p1383_p6) target bundleno = 24 (0x18), region = 32 }
  0x11   : > { %180 = sbr.rel (!%p31_p4) target bundleno = 24 (0x18), region = 36  ;;  %s182_s27 = sand.u32 (%p31_p4), 1, %s1583_s19  }
  0x12   : > { %s1475_s28 = sshll.u32 (%p31_p4), %s1587_s20, 3  ;;  %s1384_s29 = sshll.u32 (%p31_p4), %s182_s27, 5 }
  0x13   : > { %s187_s7 = scalar_lea.vmem (%p31_p4), %s2500_s0, %s1475_s28  ;;  %s184_s8 = scalar_lea.vmem (%p31_p4), [#allocation2], %s1384_s29 }
  0x14   : > { %v221_v0 = vld [vmem:[%s187_s7] sm:$0xff] (%p31_p4)  ;;  %v223_v1 = vld [vmem:[%s187_s7 + $0x10] sm:$0xff] (%p31_p4) }
  0x15   : > { %v225_v2 = vld [vmem:[%s187_s7 + $0x20] sm:$0xff] (%p31_p4)  ;;  %222 = vst [vmem:[%s184_s8] sm:$0xff] (%p31_p4), %v221_v0  ;;  %224 = vst [vmem:[%s184_s8 + $0x8] sm:$0xff] (%p31_p4), %v223_v1  ;;  %v227_v3 = vld [vmem:[%s187_s7 + $0x30] sm:$0xff] (%p31_p4) }
  0x16   : > { %226 = vst [vmem:[%s184_s8 + $0x10] sm:$0xff] (%p31_p4), %v225_v2  ;;  %228 = vst [vmem:[%s184_s8 + $0x18] sm:$0xff] (%p31_p4), %v227_v3 }
  0x18 PF: > { %p1387_p7 = scmp.ge.s32.totalorder %s1587_s20, 1  ;;  %p233_p8 = scmp.lt.s32.totalorder %s1587_s20, 3 }
  0x1a   : > { %p234_p9 = pnand %p1387_p7, %p233_p8 }
  0x1c   : > { %237 = sbr.rel (%p234_p9) target bundleno = 948 (0x3b4), region = 74 }
  0x23   : > { %s240_s9 = sand.u32 1, %s1579_s18   ;;  %v2506_v4 = vmov 0   ;;  %v1678_v9 = vld [vmem:[%s2504_s4] sm:$0xff]  ;;  %v1684_v10 = vld [vmem:[%s2504_s4 + $0x10] sm:$0xff]  ;;  %v1692_v12 = vld [vmem:[%s2504_s4 + $0x8] sm:$0xff]  ;;  %vm369_vm0 = vcmask 261120  }
  0x24   : > { %s1388_s10 = sshll.u32 %s240_s9, 5  ;;  %414 = vmatprep.mubr.bf16.mxu0 %v2506_v4  ;;  %1509 = vset.pattern.permute.xlu0 %v2506_v4  ;;  %v1539_v11 = vld [vmem:[%s2501_s1] sm:$0xff]   ;;  %v1698_v13 = vld [vmem:[%s2504_s4 + $0x18] sm:$0xff]  ;;  %v1709_v15 = vld [vmem:[%s2504_s4 + $0x28] sm:$0xff]  ;;  %v1590_v21 = vmov 2   ;;  %v1591_v22 = vmov 1  }
  0x25   : > { %1510 = vset.pattern.permute.xlu1 %v2506_v4  ;;  %s242_s11 = scalar_lea.vmem [#allocation2], %s1388_s10  ;;  %291 = vperm.xlu0 %1509, %v1678_v9   ;;  %v1703_v14 = vld [vmem:[%s2504_s4 + $0x20] sm:$0xff]  ;;  %v1540_v16 = vld [vmem:[%s2501_s1 + $0x8] sm:$0xff]   ;;  %v1721_v17 = vld [vmem:[%s2504_s4 + $0x30] sm:$0xff]  ;;  %s1592_s24 = smov 1   ;;  %vm756_vm1 = vcmask 523264  }
  0x26   : > { %v1533_v5 = vld [vmem:[%s242_s11 + $0x4] ss:$8 sps:$4 sm:$0xff]   ;;  %v1535_v6 = vld [vmem:[%s242_s11] ss:$8 sps:$4 sm:$0xff]   ;;  %v1536_v7 = vld [vmem:[%s242_s11 + $0x14] ss:$8 sps:$4 sm:$0xff]   ;;  %301 = vperm.xlu1 %1510, %v1684_v10  }
  0x27   : > { %382 = vmatprep.subr.bf16.mxu0 %v1533_v5  ;;  %v1538_v8 = vld [vmem:[%s242_s11 + $0x10] ss:$8 sps:$4 sm:$0xff]   ;;  %2517 = vst [vmem:[#allocation4_spill] sm:$0xff] %v1721_v17  ;;  %s1593_s27 = smov 127   ;;  %s1389_s30 = sshll.u32 %s240_s9, 7 }
  0x28   : > { %383 = vmatpush1.bf16.msra.mxu0 %v1535_v6  ;;  %v1727_v18 = vld [vmem:[%s2504_s4 + $0x38] sm:$0xff]  ;;  %v1541_v19 = vld [vmem:[%s2501_s1 + $0x10] sm:$0xff]   ;;  %s2449_s6 = scalar_lea.vmem [#allocation3], %s1389_s30  ;;  %s1476_s18 = sshll.u32 (%p1657_p5), %s1380_s21, 4 }
  0x29   : > { %384 = vmatprep.subr.bf16.mxu0 %v1536_v7  ;;  %296 = vperm.xlu0 %1509, %v1692_v12   ;;  %2518 = vst [vmem:[#allocation5_spill] sm:$0xff] %v1727_v18  ;;  %v1542_v20 = vld [vmem:[%s2501_s1 + $0x18] sm:$0xff]   ;;  %s1276_s26 = scalar_lea.vmem (%p1657_p5), %s2505_s5, %s1476_s18 }
  0x2a   : > { %306 = vperm.xlu1 %1510, %v1698_v13  }
  0x2c   : > { %385 = vmatpush1.bf16.msra.mxu0 %v1538_v8 }
  0x2d   : > { %311 = vperm.xlu0 %1509, %v1703_v14  }
  0x2e   : > { %316 = vperm.xlu1 %1510, %v1709_v15  }
  0x2f   : > { %1398 = vmatmul.mubr.msk.bf16.vlgmr.msra.gmra.mrb[0].mxu0 %vm369_vm0, %v1539_v11 }
  0x30   : > { %424 = vmatprep.mubr.bf16.mxu0 %v2506_v4 }
  0x31   : > { %321 = vperm.xlu0 %1509, %v1721_v17  }
  0x32   : > { %326 = vperm.xlu1 %1510, %v1727_v18  }
  0x35   : > { %1513 = vset.pattern.permute.xlu0 %v1590_v21 }
  0x36   : > { %1511 = vset.pattern.permute.xlu1 %v1591_v22 }
  0x37   : > { %1399 = vmatmul.mubr.msk.bf16.gmra.mrb[4].mxu0 %vm369_vm0, %v1540_v16 }
  0x38   : > { %434 = vmatprep.mubr.bf16.mxu0 %v2506_v4 }
  0x3f   : > { %1400 = vmatmul.mubr.msk.bf16.gmra.mrb[8].mxu0 %vm369_vm0, %v1541_v19 }
  0x40   : > { %444 = vmatprep.mubr.bf16.mxu0 %v2506_v4 }
  0x47   : > { %1401 = vmatmul.mubr.msk.bf16.gmra.mrb[12].mxu0 %vm369_vm0, %v1542_v20 }
  0x48   : > { %1194 = vmatprep.mubr.bf16.mxu0 %v2506_v4 }
  0xa4   : > { %v292_v23 = vpop.permute.xlu0 %291 }
  0xa5   : > { %v302_v33 = vpop.permute.xlu1 %301 }
  0xa8   : > { %v297_v27 = vpop.permute.xlu0 %296 }
  0xa9   : > { %v307_v41 = vpop.permute.xlu1 %306 }
  0xac   : > { %v312_v50 = vpop.permute.xlu0 %311 }
  0xad   : > { %v317_v55 = vpop.permute.xlu1 %316 }
  0xb0   : > { %v322_v0 = vpop.permute.xlu0 %321 }
  0xb1   : > { %v327_v6 = vpop.permute.xlu1 %326 }
 0x102   : > { %v416_v24 = vpop.f32.mrb[0].mxu0 }
 0x103   : > { %v417_v25 = vadd.f32 %v416_v24, %v292_v23  ;;  %v418_v26 = vpop.f32.mrb[1].mxu0 }
 0x104   : > { %v420_v28 = vpop.f32.mrb[2].mxu0  ;;  %v419_v30 = vadd.f32 %v418_v26, %v292_v23  ;;  %v1545_v26 = vld [vmem:[%s2502_s2 + $0x4] ss:$8 sps:$4 sm:$0xff]  }
 0x105   : > { %v1745_v29 = vmax.f32 %v417_v25, 0.0  ;;  %v421_v31 = vadd.f32 %v420_v28, %v297_v27  ;;  %v422_v32 = vpop.f32.mrb[3].mxu0  ;;  %1458 = vmatprep.mubr.msk.bf16.mxu1 %vm756_vm1, %v1545_v26  ;;  %v1595_v28 = vmov 4  }
 0x106   : > { %v423_v35 = vadd.f32 %v422_v32, %v297_v27  ;;  %v1751_v36 = vmax.f32 %v419_v30, 0.0  ;;  %v1594_v27 = vmov 3   ;;  %v471_v30 = vlaneseq }
 0x107   : > { %v1747_v34 = vmax.f32 %v421_v31, 0.0  ;;  %502 = vrot.lane.b32.xlu0 %v1745_v29, %s1592_s24 }
 0x108   : > { %v1755_v38 = vmax.f32 %v423_v35, 0.0  ;;  %v1859_v31 = vand.u32 127, %v471_v30 }
 0x109   : > { %504 = vrot.lane.b32.xlu1 %v1747_v34, %s1592_s24 }
 0x10a   : > { %v426_v37 = vpop.f32.mrb[4].mxu0  ;;  %v478_v35 = vand.u32 63, %v1859_v31  ;;  %vm534_vm2 = vcmp.lt.s32.totalorder %v1859_v31, 1  ;;  %vm603_vm7 = vcmp.lt.s32.totalorder %v1859_v31, 127 }
 0x10b   : > { %v427_v39 = vadd.f32 %v426_v37, %v302_v33  ;;  %v428_v40 = vpop.f32.mrb[5].mxu0  ;;  %518 = vrot.lane.b32.xlu0 %v1751_v36, %s1592_s24 }
 0x10c   : > { %v430_v42 = vpop.f32.mrb[6].mxu0  ;;  %v429_v44 = vadd.f32 %v428_v40, %v302_v33  ;;  %vm1874_vm3 = vcmp.ne.s32.totalorder %v478_v35, 0  ;;  %vm2008_vm8 = vcmp.ne.s32.totalorder %v478_v35, 63 }
 0x10d   : > { %v1759_v43 = vmax.f32 %v427_v39, 0.0  ;;  %v431_v45 = vadd.f32 %v430_v42, %v307_v41  ;;  %v432_v46 = vpop.f32.mrb[7].mxu0  ;;  %520 = vrot.lane.b32.xlu1 %v1755_v38, %s1592_s24  ;;  %vm1909_vm6 = vmpackc.low %vm1874_vm3, %vm1874_vm3 }
 0x10e   : > { %v433_v48 = vadd.f32 %v432_v46, %v307_v41  ;;  %v1767_v49 = vmax.f32 %v429_v44, 0.0  ;;  %vm2169_vm11 = vmpackc.low %vm2008_vm8, %vm2008_vm8 }
 0x10f   : > { %2519 = vst [vmem:[#allocation6_spill] sm:$0xff] %v1759_v43  ;;  %v1763_v47 = vmax.f32 %v431_v45, 0.0  ;;  %506 = vrot.lane.b32.xlu0 %v1759_v43, %s1592_s24 }
 0x110   : > { %2521 = vst [vmem:[#allocation8_spill] sm:$0xff] %v1767_v49  ;;  %v1771_v52 = vmax.f32 %v433_v48, 0.0 }
 0x111   : > { %2520 = vst [vmem:[#allocation7_spill] sm:$0xff] %v1763_v47  ;;  %508 = vrot.lane.b32.xlu1 %v1763_v47, %s1592_s24  ;;  %v698_v35 = vpack.c.bf16 %v1763_v47, %v1759_v43 }
 0x112   : > { %v436_v51 = vpop.f32.mrb[8].mxu0  ;;  %2522 = vst [vmem:[#allocation9_spill] sm:$0xff] %v1771_v52 }
 0x113   : > { %v437_v53 = vadd.f32 %v436_v51, %v312_v50  ;;  %v438_v54 = vpop.f32.mrb[9].mxu0  ;;  %522 = vrot.lane.b32.xlu0 %v1767_v49, %s1592_s24 }
 0x114   : > { %v440_v56 = vpop.f32.mrb[10].mxu0  ;;  %v439_v58 = vadd.f32 %v438_v54, %v312_v50 }
 0x115   : > { %v1775_v57 = vmax.f32 %v437_v53, 0.0  ;;  %v441_v59 = vadd.f32 %v440_v56, %v317_v55  ;;  %v442_v60 = vpop.f32.mrb[11].mxu0  ;;  %524 = vrot.lane.b32.xlu1 %v1771_v52, %s1592_s24  ;;  %v699_v53 = vpack.c.bf16 %v1771_v52, %v1767_v49 }
 0x116   : > { %v443_v62 = vadd.f32 %v442_v60, %v317_v55  ;;  %v1783_v63 = vmax.f32 %v439_v58, 0.0 }
 0x117   : > { %v1779_v61 = vmax.f32 %v441_v59, 0.0  ;;  %510 = vrot.lane.b32.xlu0 %v1775_v57, %s1592_s24 }
 0x118   : > { %v1787_v2 = vmax.f32 %v443_v62, 0.0 }
 0x119   : > { %2523 = vst [vmem:[#allocation10_spill] sm:$0xff] %v1779_v61  ;;  %512 = vrot.lane.b32.xlu1 %v1779_v61, %s1592_s24 }
 0x11a   : > { %v446_v1 = vpop.f32.mrb[12].mxu0  ;;  %2524 = vst [vmem:[#allocation11_spill] sm:$0xff] %v1787_v2 }
 0x11b   : > { %v447_v3 = vadd.f32 %v446_v1, %v322_v0  ;;  %v448_v5 = vpop.f32.mrb[13].mxu0  ;;  %526 = vrot.lane.b32.xlu0 %v1783_v63, %s1592_s24 }
 0x11c   : > { %v450_v7 = vpop.f32.mrb[14].mxu0  ;;  %v449_v11 = vadd.f32 %v448_v5, %v322_v0 }
 0x11d   : > { %v1791_v8 = vmax.f32 %v447_v3, 0.0  ;;  %v451_v16 = vadd.f32 %v450_v7, %v327_v6  ;;  %v452_v19 = vpop.f32.mrb[15].mxu0  ;;  %528 = vrot.lane.b32.xlu1 %v1787_v2, %s1592_s24 }
 0x11e   : > { %v453_v23 = vadd.f32 %v452_v19, %v327_v6  ;;  %v1799_v24 = vmax.f32 %v449_v11, 0.0 }
 0x11f   : > { %v1795_v20 = vmax.f32 %v451_v16, 0.0  ;;  %514 = vrot.lane.b32.xlu0 %v1791_v8, %s1592_s24 }
 0x120   : > { %v1803_v25 = vmax.f32 %v453_v23, 0.0 }
 0x121   : > { %516 = vrot.lane.b32.xlu1 %v1795_v20, %s1592_s24 }
 0x123   : > { %530 = vrot.lane.b32.xlu0 %v1799_v24, %s1592_s24 }
 0x125   : > { %532 = vrot.lane.b32.xlu1 %v1803_v25, %s1592_s24 }
 0x127   : > { %571 = vrot.lane.b32.xlu0 %v1745_v29, %s1593_s27 }
 0x129   : > { %573 = vrot.lane.b32.xlu1 %v1747_v34, %s1593_s27 }
 0x12b   : > { %587 = vrot.lane.b32.xlu0 %v1751_v36, %s1593_s27 }
 0x12d   : > { %589 = vrot.lane.b32.xlu1 %v1755_v38, %s1593_s27 }
 0x12f   : > { %575 = vrot.lane.b32.xlu0 %v1759_v43, %s1593_s27 }
 0x131   : > { %577 = vrot.lane.b32.xlu1 %v1763_v47, %s1593_s27 }
 0x133   : > { %591 = vrot.lane.b32.xlu0 %v1767_v49, %s1593_s27 }
 0x135   : > { %593 = vrot.lane.b32.xlu1 %v1771_v52, %s1593_s27 }
 0x137   : > { %579 = vrot.lane.b32.xlu0 %v1775_v57, %s1593_s27 }
 0x139   : > { %581 = vrot.lane.b32.xlu1 %v1779_v61, %s1593_s27 }
 0x13b   : > { %595 = vrot.lane.b32.xlu0 %v1783_v63, %s1593_s27 }
 0x13d   : > { %597 = vrot.lane.b32.xlu1 %v1787_v2, %s1593_s27 }
 0x13f   : > { %583 = vrot.lane.b32.xlu0 %v1791_v8, %s1593_s27 }
 0x141   : > { %585 = vrot.lane.b32.xlu1 %v1795_v20, %s1593_s27 }
 0x143   : > { %599 = vrot.lane.b32.xlu0 %v1799_v24, %s1593_s27 }
 0x145   : > { %601 = vrot.lane.b32.xlu1 %v1803_v25, %s1593_s27 }
 0x147   : > { %895 = vperm.xlu0 %1513, %v1692_v12  }
 0x149   : > { %847 = vperm.xlu1 %1511, %v1692_v12  }
 0x14b   : > { %903 = vperm.xlu0 %1513, %v1698_v13  }
 0x14d   : > { %1512 = vset.pattern.permute.xlu1 %v1590_v21 }
 0x14e   : > { %891 = vperm.xlu1 %1512, %v1678_v9  }
 0x14f   : > { %911 = vperm.xlu0 %1513, %v1709_v15  }
 0x152   : > { %1514 = vset.pattern.permute.xlu1 %v1594_v27 }
 0x153   : > { %955 = vperm.xlu1 %1514, %v1678_v9   ;;  %1520 = vset.pattern.permute.xlu0 %v1591_v22 }
 0x154   : > { %843 = vperm.xlu0 %1520, %v1678_v9  }
 0x157   : > { %959 = vperm.xlu1 %1514, %v1692_v12  }
 0x158   : > { %851 = vperm.xlu0 %1520, %v1684_v10  }
 0x15b   : > { %1515 = vset.pattern.permute.xlu1 %v1591_v22 }
 0x15c   : > { %855 = vperm.xlu1 %1515, %v1698_v13   ;;  %859 = vperm.xlu0 %1520, %v1703_v14  }
 0x160   : > { %1516 = vset.pattern.permute.xlu1 %v1590_v21  ;;  %871 = vperm.xlu0 %1520, %v1727_v18  }
 0x161   : > { %899 = vperm.xlu1 %1516, %v1684_v10  }
 0x164   : > { %1525 = vset.pattern.permute.xlu0 %v1595_v28 }
 0x165   : > { %1517 = vset.pattern.permute.xlu1 %v1594_v27  ;;  %1043 = vperm.xlu0 %1525, %v1684_v10  }
 0x166   : > { %963 = vperm.xlu1 %1517, %v1684_v10   ;;  %v1864_v10 = vadd.s32 128, %v1859_v31 }
 0x168   : > { %v485_v37 = vand.u32 63, %v1864_v10 }
 0x169   : > { %1526 = vset.pattern.permute.xlu0 %v1594_v27 }
 0x16a   : > { %967 = vperm.xlu1 %1517, %v1698_v13   ;;  %971 = vperm.xlu0 %1526, %v1703_v14   ;;  %vm1880_vm4 = vcmp.ne.s32.totalorder %v485_v37, 0  ;;  %vm2014_vm9 = vcmp.ne.s32.totalorder %v485_v37, 63 }
 0x16b   : > { %vm1899_vm5 = vmpackc.low %vm1880_vm4, %vm1880_vm4 }
 0x16c   : > { %vm2138_vm10 = vmpackc.low %vm2014_vm9, %vm2014_vm9 }
 0x16e   : > { %1518 = vset.pattern.permute.xlu1 %v1591_v22  ;;  %983 = vperm.xlu0 %1526, %v1727_v18  }
 0x16f   : > { %863 = vperm.xlu1 %1518, %v1709_v15  }
 0x172   : > { %1530 = vset.pattern.permute.xlu0 %v1595_v28 }
 0x173   : > { %1519 = vset.pattern.permute.xlu1 %v1590_v21  ;;  %1059 = vperm.xlu0 %1530, %v1721_v17  }
 0x174   : > { %907 = vperm.xlu1 %1519, %v1703_v14  }
 0x178   : > { %1521 = vset.pattern.permute.xlu1 %v1595_v28 }
 0x179   : > { %1035 = vperm.xlu1 %1521, %v1678_v9   ;;  %v503_v32 = vpop.permute.xlu0 %502 }
 0x17b   : > { %v505_v33 = vpop.permute.xlu1 %504 }
 0x17d   : > { %1039 = vperm.xlu1 %1521, %v1692_v12   ;;  %v519_v39 = vpop.permute.xlu0 %518 }
 0x17e   : > { %v535_v42 = vsel %vm534_vm2, %v503_v32, %v519_v39  ;;  %v543_v12 = vsel %vm534_vm2, %v519_v39, %v503_v32 }
 0x17f   : > { %v521_v41 = vpop.permute.xlu1 %520 }
 0x180   : > { %v1890_v44 = vsel %vm534_vm2, %v505_v33, %v521_v41  ;;  %v1894_v45 = vsel %vm534_vm2, %v521_v41, %v505_v33 }
 0x181   : > { %v1414_v48 = vpack.c.bf16 %v1894_v45, %v543_v12  ;;  %1522 = vset.pattern.permute.xlu1 %v1594_v27  ;;  %v507_v50 = vpop.permute.xlu0 %506  ;;  %v1411_v51 = vpack.c.bf16 %v1890_v44, %v535_v42  ;;  %v557_v10 = vsel %vm1874_vm3, %v1894_v45, 0.0  ;;  %v558_v37 = vsel %vm1880_vm4, %v1890_v44, 0.0 }
 0x182   : > { %975 = vperm.xlu1 %1522, %v1709_v15  }
 0x183   : > { %v509_v54 = vpop.permute.xlu1 %508  ;;  %1412 = vmatprep.subr.msk.bf16.mxu1 %vm1899_vm5, %v1411_v51 }
 0x184   : > { %1415 = vmatpush1.bf16.msk.msra.mxu1 %vm1909_vm6, %v1414_v48 }
 0x185   : > { %v523_v55 = vpop.permute.xlu0 %522 }
 0x186   : > { %1523 = vset.pattern.permute.xlu1 %v1591_v22  ;;  %v1922_v58 = vsel %vm534_vm2, %v507_v50, %v523_v55  ;;  %v1926_v59 = vsel %vm534_vm2, %v523_v55, %v507_v50 }
 0x187   : > { %867 = vperm.xlu1 %1523, %v1721_v17   ;;  %v525_v56 = vpop.permute.xlu1 %524 }
 0x188   : > { %v1930_v60 = vsel %vm534_vm2, %v509_v54, %v525_v56  ;;  %v1934_v62 = vsel %vm534_vm2, %v525_v56, %v509_v54  ;;  %v697_v56 = vpack.c.bf16 %v1755_v38, %v1751_v36 }
 0x189   : > { %v1417_v22 = vpack.c.bf16 %v1930_v60, %v1922_v58  ;;  %v1420_v0 = vpack.c.bf16 %v1934_v62, %v1926_v59  ;;  %v511_v1 = vpop.permute.xlu0 %510 }
 0x18b   : > { %1524 = vset.pattern.permute.xlu1 %v1590_v21  ;;  %v513_v3 = vpop.permute.xlu1 %512  ;;  %1418 = vmatprep.subr.msk.bf16.mxu1 %vm1899_vm5, %v1417_v22  ;;  %v555_v22 = vsel %vm1874_vm3, %v543_v12, 0.0 }
 0x18c   : > { %915 = vperm.xlu1 %1524, %v1721_v17   ;;  %1421 = vmatpush1.bf16.msk.msra.mxu1 %vm1909_vm6, %v1420_v0  ;;  %v556_v0 = vsel %vm1880_vm4, %v535_v42, 0.0  ;;  %v696_v42 = vpack.c.bf16 %v1747_v34, %v1745_v29 }
 0x18d   : > { %v527_v5 = vpop.permute.xlu0 %526 }
 0x18e   : > { %v1948_v7 = vsel %vm534_vm2, %v511_v1, %v527_v5  ;;  %v1952_v11 = vsel %vm534_vm2, %v527_v5, %v511_v1  ;;  %v701_v1 = vpack.c.bf16 %v1787_v2, %v1783_v63 }
 0x18f   : > { %v529_v6 = vpop.permute.xlu1 %528 }
 0x190   : > { %v1956_v21 = vsel %vm534_vm2, %v513_v3, %v529_v6  ;;  %v1960_v16 = vsel %vm534_vm2, %v529_v6, %v513_v3  ;;  %919 = vperm.xlu1 %1524, %v1727_v18   ;;  %v656_v6 = vmax.f32 %v555_v22, %v1745_v29 }
 0x191   : > { %v1423_v19 = vpack.c.bf16 %v1956_v21, %v1948_v7  ;;  %v1426_v23 = vpack.c.bf16 %v1960_v16, %v1952_v11  ;;  %v515_v26 = vpop.permute.xlu0 %514 }
 0x193   : > { %v517_v30 = vpop.permute.xlu1 %516  ;;  %1424 = vmatprep.subr.msk.bf16.mxu1 %vm1899_vm5, %v1423_v19  ;;  %v657_v19 = vmax.f32 %v556_v0, %v1751_v36 }
 0x194   : > { %1527 = vset.pattern.permute.xlu1 %v1595_v28  ;;  %1427 = vmatpush1.bf16.msk.msra.mxu1 %vm1909_vm6, %v1426_v23 }
 0x195   : > { %1047 = vperm.xlu1 %1527, %v1698_v13   ;;  %v531_v32 = vpop.permute.xlu0 %530 }
 0x196   : > { %v1975_v39 = vsel %vm534_vm2, %v515_v26, %v531_v32  ;;  %v1979_v41 = vsel %vm534_vm2, %v531_v32, %v515_v26 }
 0x197   : > { %v533_v33 = vpop.permute.xlu1 %532 }
 0x198   : > { %v1983_v48 = vsel %vm534_vm2, %v517_v30, %v533_v33  ;;  %v1987_v50 = vsel %vm534_vm2, %v533_v33, %v517_v30  ;;  %v658_v33 = vmax.f32 %v557_v10, %v1747_v34 }
 0x199   : > { %v1429_v13 = vpack.c.bf16 %v1983_v48, %v1975_v39  ;;  %v1432_v51 = vpack.c.bf16 %v1987_v50, %v1979_v41  ;;  %1528 = vset.pattern.permute.xlu1 %v1594_v27  ;;  %v572_v54 = vpop.permute.xlu0 %571  ;;  %v1543_v27 = vld [vmem:[%s2502_s2] ss:$8 sps:$4 sm:$0xff]  }
 0x19a   : > { %979 = vperm.xlu1 %1528, %v1721_v17   ;;  %v563_v17 = vsel %vm1874_vm3, %v1952_v11, 0.0 }
 0x19b   : > { %v574_v55 = vpop.permute.xlu1 %573  ;;  %1430 = vmatprep.subr.msk.bf16.mxu1 %vm1899_vm5, %v1429_v13  ;;  %v659_v13 = vmax.f32 %v558_v37, %v1755_v38 }
 0x19c   : > { %1433 = vmatpush1.bf16.msk.msra.mxu1 %vm1909_vm6, %v1432_v51 }
 0x19d   : > { %777 = vmatprep.subr.bf16.mxu1 %v697_v56  ;;  %v588_v12 = vpop.permute.xlu0 %587 }
 0x19e   : > { %v2034_v3 = vsel %vm603_vm7, %v572_v54, %v588_v12  ;;  %v2038_v5 = vsel %vm603_vm7, %v588_v12, %v572_v54  ;;  %1529 = vset.pattern.permute.xlu1 %v1595_v28  ;;  %v559_v12 = vsel %vm1874_vm3, %v1926_v59, 0.0 }
 0x19f   : > { %v624_v45 = vsel %vm2008_vm8, %v2034_v3, 0.0  ;;  %v625_v44 = vsel %vm2014_vm9, %v2038_v5, 0.0  ;;  %v590_v23 = vpop.permute.xlu1 %589  ;;  %1051 = vperm.xlu1 %1529, %v1703_v14  }
 0x1a0   : > { %v2052_v26 = vsel %vm603_vm7, %v574_v55, %v590_v23  ;;  %v2056_v28 = vsel %vm603_vm7, %v590_v23, %v574_v55  ;;  %778 = vmatpush1.bf16.msra.mxu1 %v696_v42  ;;  %v2058_v30 = vadd.f32 %v624_v45, %v555_v22  ;;  %v2060_v32 = vadd.f32 %v625_v44, %v556_v0 }
 0x1a1   : > { %v626_v14 = vsel %vm2008_vm8, %v2052_v26, 0.0  ;;  %v627_v51 = vsel %vm2014_vm9, %v2056_v28, 0.0  ;;  %v576_v54 = vpop.permute.xlu0 %575  ;;  %779 = vmatprep.subr.bf16.mxu1 %v699_v53  ;;  %v2074_v22 = vmax.f32 %v656_v6, %v624_v45  ;;  %v2076_v0 = vmax.f32 %v657_v19, %v625_v44 }
 0x1a2   : > { %v2070_v55 = vadd.f32 %v626_v14, %v557_v10  ;;  %v2072_v56 = vadd.f32 %v627_v51, %v558_v37  ;;  %v560_v42 = vsel %vm1880_vm4, %v1922_v58, 0.0  ;;  %v2084_v4 = vmax.f32 %v658_v33, %v626_v14 }
 0x1a3   : > { %v578_v23 = vpop.permute.xlu1 %577  ;;  %v2086_v53 = vmax.f32 %v659_v13, %v627_v51  ;;  %1055 = vperm.xlu1 %1529, %v1709_v15   ;;  %v561_v10 = vsel %vm1874_vm3, %v1934_v62, 0.0  ;;  %v562_v37 = vsel %vm1880_vm4, %v1930_v60, 0.0  ;;  %v700_v58 = vpack.c.bf16 %v1779_v61, %v1775_v57 }
 0x1a4   : > { %780 = vmatpush1.bf16.msra.mxu1 %v698_v35  ;;  %v703_v6 = vpack.c.bf16 %v1803_v25, %v1799_v24  ;;  %v702_v15 = vpack.c.bf16 %v1795_v20, %v1791_v8  ;;  %v660_v19 = vmax.f32 %v559_v12, %v1759_v43  ;;  %v661_v62 = vmax.f32 %v560_v42, %v1767_v49 }
 0x1a5   : > { %v592_v59 = vpop.permute.xlu0 %591  ;;  %781 = vmatprep.subr.bf16.mxu1 %v701_v1  ;;  %v662_v35 = vmax.f32 %v561_v10, %v1763_v47  ;;  %v663_v1 = vmax.f32 %v562_v37, %v1771_v52  ;;  %v564_v52 = vsel %vm1880_vm4, %v1948_v7, 0.0 }
 0x1a6   : > { %v2105_v45 = vsel %vm603_vm7, %v576_v54, %v592_v59  ;;  %v614_v60 = vsel %vm603_vm7, %v592_v59, %v576_v54 }
 0x1a7   : > { %v628_v44 = vsel %vm2008_vm8, %v2105_v45, 0.0  ;;  %v629_v33 = vsel %vm2014_vm9, %v614_v60, 0.0  ;;  %v594_v13 = vpop.permute.xlu1 %593  ;;  %1063 = vperm.xlu1 %1529, %v1727_v18  }
 0x1a8   : > { %v607_v14 = vsel %vm603_vm7, %v578_v23, %v594_v13  ;;  %v615_v51 = vsel %vm603_vm7, %v594_v13, %v578_v23  ;;  %782 = vmatpush1.bf16.msra.mxu1 %v700_v58  ;;  %v2121_v54 = vadd.f32 %v628_v44, %v559_v12  ;;  %v2123_v59 = vadd.f32 %v629_v33, %v560_v42  ;;  %v1548_v12 = vld [vmem:[%s2502_s2 + $0x10] ss:$8 sps:$4 sm:$0xff]  }
 0x1a9   : > { %v630_v18 = vsel %vm2008_vm8, %v607_v14, 0.0  ;;  %v631_v47 = vsel %vm2014_vm9, %v615_v51, 0.0  ;;  %v580_v23 = vpop.permute.xlu0 %579  ;;  %783 = vmatprep.subr.bf16.mxu1 %v703_v6  ;;  %v2146_v7 = vmax.f32 %v660_v19, %v628_v44  ;;  %v2148_v58 = vmax.f32 %v661_v62, %v629_v33 }
 0x1aa   : > { %2537 = vst [vmem:[#allocation12_spill] sm:$0xff] %v2123_v59  ;;  %v2142_v11 = vadd.f32 %v630_v18, %v561_v10  ;;  %v2144_v42 = vadd.f32 %v631_v47, %v562_v37  ;;  %v565_v13 = vsel %vm1874_vm3, %v1960_v16, 0.0  ;;  %v1435_v6 = vpack.c.bf16 %v2056_v28, %v2038_v5 }
 0x1ab   : > { %v582_v49 = vpop.permute.xlu1 %581  ;;  %v2155_v43 = vmax.f32 %v662_v35, %v630_v18  ;;  %v2157_v59 = vmax.f32 %v663_v1, %v631_v47  ;;  %v566_v10 = vsel %vm1880_vm4, %v1956_v21, 0.0  ;;  %v664_v37 = vmax.f32 %v563_v17, %v1775_v57 }
 0x1ac   : > { %784 = vmatpush1.bf16.msra.mxu1 %v702_v15  ;;  %v665_v19 = vmax.f32 %v564_v52, %v1783_v63  ;;  %v666_v47 = vmax.f32 %v565_v13, %v1779_v61  ;;  %v1438_v21 = vpack.c.bf16 %v2052_v26, %v2034_v3  ;;  %v667_v28 = vmax.f32 %v566_v10, %v1787_v2 }
 0x1ad   : > { %v596_v62 = vpop.permute.xlu0 %595  ;;  %1436 = vmatprep.subr.msk.bf16.mxu1 %vm2138_vm10, %v1435_v6  ;;  %v1441_v15 = vpack.c.bf16 %v615_v51, %v614_v60  ;;  %v567_v60 = vsel %vm1874_vm3, %v1979_v41, 0.0  ;;  %v1444_v51 = vpack.c.bf16 %v607_v14, %v2105_v45  ;;  %v568_v41 = vsel %vm1880_vm4, %v1975_v39, 0.0 }
 0x1ae   : > { %v608_v16 = vsel %vm603_vm7, %v580_v23, %v596_v62  ;;  %v616_v5 = vsel %vm603_vm7, %v596_v62, %v580_v23 }
 0x1af   : > { %v632_v35 = vsel %vm2008_vm8, %v608_v16, 0.0  ;;  %v633_v1 = vsel %vm2014_vm9, %v616_v5, 0.0  ;;  %v598_v44 = vpop.permute.xlu1 %597 }
 0x1b0   : > { %v609_v33 = vsel %vm603_vm7, %v582_v49, %v598_v44  ;;  %v617_v3 = vsel %vm603_vm7, %v598_v44, %v582_v49  ;;  %1439 = vmatpush1.bf16.msk.msra.mxu1 %vm2169_vm11, %v1438_v21  ;;  %v2191_v26 = vmax.f32 %v664_v37, %v632_v35  ;;  %v2193_v23 = vmax.f32 %v665_v19, %v633_v1 }
 0x1b1   : > { %v634_v6 = vsel %vm2008_vm8, %v609_v33, 0.0  ;;  %v635_v62 = vsel %vm2014_vm9, %v617_v3, 0.0  ;;  %v584_v49 = vpop.permute.xlu0 %583  ;;  %1442 = vmatprep.subr.msk.bf16.mxu1 %vm2138_vm10, %v1441_v15  ;;  %v2209_v21 = vadd.f32 %v632_v35, %v563_v17  ;;  %v2211_v44 = vadd.f32 %v633_v1, %v564_v52 }
 0x1b2   : > { %v2205_v37 = vadd.f32 %v634_v6, %v565_v13  ;;  %v2207_v19 = vadd.f32 %v635_v62, %v566_v10  ;;  %v1447_v45 = vpack.c.bf16 %v617_v3, %v616_v5  ;;  %v2216_v2 = vmax.f32 %v666_v47, %v634_v6 }
 0x1b3   : > { %v586_v14 = vpop.permute.xlu1 %585  ;;  %v2218_v61 = vmax.f32 %v667_v28, %v635_v62  ;;  %v569_v13 = vsel %vm1874_vm3, %v1987_v50, 0.0  ;;  %v570_v17 = vsel %vm1880_vm4, %v1983_v48, 0.0  ;;  %v668_v52 = vmax.f32 %v567_v60, %v1791_v8 }
 0x1b4   : > { %1445 = vmatpush1.bf16.msk.msra.mxu1 %vm2169_vm11, %v1444_v51  ;;  %v669_v10 = vmax.f32 %v568_v41, %v1799_v24  ;;  %v1450_v47 = vpack.c.bf16 %v609_v33, %v608_v16  ;;  %v670_v9 = vmax.f32 %v569_v13, %v1795_v20  ;;  %v671_v48 = vmax.f32 %v570_v17, %v1803_v25 }
 0x1b5   : > { %v600_v39 = vpop.permute.xlu0 %599  ;;  %1448 = vmatprep.subr.msk.bf16.mxu1 %vm2138_vm10, %v1447_v45 }
 0x1b6   : > { %v610_v40 = vsel %vm603_vm7, %v584_v49, %v600_v39  ;;  %v618_v50 = vsel %vm603_vm7, %v600_v39, %v584_v49  ;;  %v1551_v39 = vld [vmem:[%s2502_s2 + $0x20] ss:$8 sps:$4 sm:$0xff]  }
 0x1b7   : > { %v636_v5 = vsel %vm2008_vm8, %v610_v40, 0.0  ;;  %v637_v28 = vsel %vm2014_vm9, %v618_v50, 0.0  ;;  %v602_v15 = vpop.permute.xlu1 %601 }
 0x1b8   : > { %v611_v16 = vsel %vm603_vm7, %v586_v14, %v602_v15  ;;  %v619_v35 = vsel %vm603_vm7, %v602_v15, %v586_v14  ;;  %1451 = vmatpush1.bf16.msk.msra.mxu1 %vm2169_vm11, %v1450_v47  ;;  %v2248_v1 = vadd.f32 %v636_v5, %v567_v60  ;;  %v2250_v33 = vadd.f32 %v637_v28, %v568_v41  ;;  %v1546_v41 = vld [vmem:[%s2502_s2 + $0x14] ss:$8 sps:$4 sm:$0xff]  }
 0x1b9   : > { %v638_v3 = vsel %vm2008_vm8, %v611_v16, 0.0  ;;  %v639_v51 = vsel %vm2014_vm9, %v619_v35, 0.0  ;;  %v1453_v6 = vpack.c.bf16 %v619_v35, %v618_v50  ;;  %v1456_v62 = vpack.c.bf16 %v611_v16, %v610_v40 }
 0x1ba   : > { %v2256_v49 = vmax.f32 %v670_v9, %v638_v3  ;;  %v2258_v45 = vmax.f32 %v671_v48, %v639_v51  ;;  %v2260_v31 = vadd.f32 %v638_v3, %v569_v13  ;;  %v2262_v14 = vadd.f32 %v639_v51, %v570_v17  ;;  %v1549_v13 = vld [vmem:[%s2502_s2 + $0x24] ss:$8 sps:$4 sm:$0xff]  }
 0x1bb   : > { %1454 = vmatprep.subr.msk.bf16.mxu1 %vm2138_vm10, %v1453_v6  ;;  %v2269_v60 = vmax.f32 %v668_v52, %v636_v5  ;;  %v2271_v46 = vmax.f32 %v669_v10, %v637_v28  ;;  %v1552_v10 = vld [vmem:[%s2502_s2 + $0x34] ss:$8 sps:$4 sm:$0xff]   ;;  %v1554_v28 = vld [vmem:[%s2502_s2 + $0x30] ss:$8 sps:$4 sm:$0xff]  }
 0x1bc   : > { %1457 = vmatpush1.bf16.msk.msra.mxu1 %vm2169_vm11, %v1456_v62 }
 0x1bf   : > { %802 = vmatmul.mubr.bf16.vlgmr.msra.gmra.mrb[0].mxu1 %v1543_v27 }
 0x1c0   : > { %1459 = vmatprep.mubr.msk.bf16.mxu1 %vm756_vm1, %v1546_v41 }
 0x1c6   : > { %v896_v17 = vpop.permute.xlu0 %895 }
 0x1c7   : > { %812 = vmatmul.mubr.bf16.gmra.mrb[4].mxu1 %v1548_v12  ;;  %v924_v51 = vmul.f32 %v896_v17, %v2070_v55  ;;  %v925_v6 = vmul.f32 %v896_v17, %v2072_v56 }
 0x1c8   : > { %v848_v52 = vpop.permute.xlu1 %847  ;;  %1460 = vmatprep.mubr.msk.bf16.mxu1 %vm756_vm1, %v1549_v13 }
 0x1c9   : > { %v876_v9 = vmul.f32 %v848_v52, %v1747_v34  ;;  %v877_v48 = vmul.f32 %v848_v52, %v1755_v38 }
 0x1ca   : > { %v904_v18 = vpop.permute.xlu0 %903 }
 0x1cb   : > { %v940_v12 = vadd.f32 %v924_v51, %v876_v9  ;;  %v941_v13 = vadd.f32 %v925_v6, %v877_v48  ;;  %v2545_v48 = vld [vmem:[#allocation7_spill] sm:$0xff] }
 0x1cd   : > { %v892_v47 = vpop.permute.xlu1 %891 }
 0x1ce   : > { %v2292_v40 = vpop.permute.xlu0 %911  ;;  %v922_v15 = vmul.f32 %v892_v47, %v2058_v30  ;;  %v923_v16 = vmul.f32 %v892_v47, %v2060_v32 }
 0x1cf   : > { %822 = vmatmul.mubr.bf16.gmra.mrb[8].mxu1 %v1551_v39  ;;  %v2542_v39 = vld [vmem:[#allocation12_spill] sm:$0xff] }
 0x1d0   : > { %1461 = vmatprep.mubr.msk.bf16.mxu1 %vm756_vm1, %v1552_v10 }
 0x1d2   : > { %v956_v50 = vpop.permute.xlu1 %955 }
 0x1d3   : > { %v844_v5 = vpop.permute.xlu0 %843  ;;  %v986_v34 = vmul.f32 %v956_v50, %v2074_v22  ;;  %v987_v38 = vmul.f32 %v956_v50, %v2076_v0 }
 0x1d4   : > { %v874_v35 = vmul.f32 %v844_v5, %v1745_v29  ;;  %v875_v3 = vmul.f32 %v844_v5, %v1751_v36 }
 0x1d6   : > { %v938_v62 = vadd.f32 %v922_v15, %v874_v35  ;;  %v939_v27 = vadd.f32 %v923_v16, %v875_v3  ;;  %v960_v41 = vpop.permute.xlu1 %959 }
 0x1d7   : > { %v988_v30 = vmul.f32 %v960_v41, %v2084_v4  ;;  %v989_v32 = vmul.f32 %v960_v41, %v2086_v53  ;;  %832 = vmatmul.mubr.bf16.gmra.mrb[12].mxu1 %v1554_v28  ;;  %v852_v0 = vpop.permute.xlu0 %851  ;;  %v2543_v4 = vld [vmem:[#allocation6_spill] sm:$0xff]  ;;  %v2544_v53 = vld [vmem:[#allocation8_spill] sm:$0xff]  ;;  %v2546_v28 = vld [vmem:[#allocation9_spill] sm:$0xff] }
 0x1d8   : > { %v2310_v29 = vadd.f32 %v986_v34, %v938_v62  ;;  %v2312_v36 = vadd.f32 %v987_v38, %v939_v27  ;;  %v878_v50 = vmul.f32 %v852_v0, %v2543_v4  ;;  %v879_v9 = vmul.f32 %v852_v0, %v2544_v53 }
 0x1d9   : > { %v2314_v55 = vadd.f32 %v988_v30, %v940_v12  ;;  %v2316_v56 = vadd.f32 %v989_v32, %v941_v13  ;;  %v929_v34 = vmul.f32 %v904_v18, %v2144_v42 }
 0x1db   : > { %v856_v22 = vpop.permute.xlu1 %855  ;;  %v860_v47 = vpop.permute.xlu0 %859 }
 0x1dc   : > { %v880_v5 = vmul.f32 %v856_v22, %v2545_v48  ;;  %v881_v15 = vmul.f32 %v856_v22, %v2546_v28  ;;  %v882_v0 = vmul.f32 %v860_v47, %v1775_v57  ;;  %v2547_v57 = vld [vmem:[#allocation10_spill] sm:$0xff] }
 0x1de   : > { %v945_v13 = vadd.f32 %v929_v34, %v881_v15 }
 0x1df   : > { %v872_v27 = vpop.permute.xlu0 %871 }
 0x1e0   : > { %v900_v17 = vpop.permute.xlu1 %899 }
 0x1e1   : > { %v926_v52 = vmul.f32 %v900_v17, %v2121_v54  ;;  %v927_v10 = vmul.f32 %v900_v17, %v2542_v39  ;;  %v928_v54 = vmul.f32 %v904_v18, %v2142_v11  ;;  %v883_v17 = vmul.f32 %v860_v47, %v1783_v63  ;;  %v2548_v47 = vld [vmem:[#allocation11_spill] sm:$0xff] }
 0x1e3   : > { %v942_v35 = vadd.f32 %v926_v52, %v878_v50  ;;  %v943_v3 = vadd.f32 %v927_v10, %v879_v9  ;;  %v944_v12 = vadd.f32 %v928_v54, %v880_v5 }
 0x1e5   : > { %v964_v16 = vpop.permute.xlu1 %963 }
 0x1e6   : > { %v990_v51 = vmul.f32 %v964_v16, %v2146_v7  ;;  %v991_v6 = vmul.f32 %v964_v16, %v2148_v58  ;;  %v2338_v58 = vpop.permute.xlu0 %1043 }
 0x1e8   : > { %v2328_v38 = vadd.f32 %v990_v51, %v942_v35  ;;  %v2330_v62 = vadd.f32 %v991_v6, %v943_v3 }
 0x1e9   : > { %v968_v41 = vpop.permute.xlu1 %967 }
 0x1ea   : > { %v992_v30 = vmul.f32 %v968_v41, %v2155_v43  ;;  %v993_v32 = vmul.f32 %v968_v41, %v2157_v59  ;;  %v972_v42 = vpop.permute.xlu0 %971  ;;  %v889_v41 = vmul.f32 %v872_v27, %v1803_v25 }
 0x1eb   : > { %v994_v43 = vmul.f32 %v972_v42, %v2191_v26  ;;  %v995_v59 = vmul.f32 %v972_v42, %v2193_v23  ;;  %v933_v26 = vmul.f32 %v2292_v40, %v2207_v19 }
 0x1ec   : > { %v2334_v22 = vadd.f32 %v992_v30, %v944_v12  ;;  %v2336_v7 = vadd.f32 %v993_v32, %v945_v13 }
 0x1ee   : > { %v864_v11 = vpop.permute.xlu1 %863  ;;  %v984_v54 = vpop.permute.xlu0 %983 }
 0x1ef   : > { %v884_v63 = vmul.f32 %v864_v11, %v2547_v57 }
 0x1f3   : > { %v908_v18 = vpop.permute.xlu1 %907 }
 0x1f4   : > { %v930_v52 = vmul.f32 %v908_v18, %v2209_v21  ;;  %v931_v39 = vmul.f32 %v908_v18, %v2211_v44  ;;  %v885_v21 = vmul.f32 %v864_v11, %v2548_v47  ;;  %v932_v44 = vmul.f32 %v2292_v40, %v2205_v37 }
 0x1f5   : > { %v888_v37 = vmul.f32 %v872_v27, %v1795_v20 }
 0x1f6   : > { %v946_v10 = vadd.f32 %v930_v52, %v882_v0  ;;  %v947_v4 = vadd.f32 %v931_v39, %v883_v17  ;;  %v948_v5 = vadd.f32 %v932_v44, %v884_v63  ;;  %v949_v28 = vadd.f32 %v933_v26, %v885_v21  ;;  %v1564_v39 = vld [vmem:[%s2504_s4 + $0x28] sm:$0xff] }
 0x1f7   : > { %v1596_v52 = vmov 5  }
 0x1f8   : > { %v2346_v50 = vpop.permute.xlu1 %1035  ;;  %v2348_v53 = vadd.f32 %v994_v43, %v946_v10  ;;  %v2350_v9 = vadd.f32 %v995_v59, %v947_v4  ;;  %1531 = vset.pattern.permute.xlu1 %v1596_v52  ;;  %1532 = vset.pattern.permute.xlu0 %v1596_v52  ;;  %v2550_v43 = vld [vmem:[#allocation5_spill] sm:$0xff] }
 0x1fc   : > { %v2352_v48 = vpop.permute.xlu1 %1039 }
 0x201   : > { %v976_v23 = vpop.permute.xlu1 %975 }
 0x202   : > { %v996_v15 = vmul.f32 %v976_v23, %v2216_v2  ;;  %v997_v16 = vmul.f32 %v976_v23, %v2218_v61  ;;  %v1000_v2 = vmul.f32 %v984_v54, %v2256_v49  ;;  %v1001_v61 = vmul.f32 %v984_v54, %v2258_v45 }
 0x204   : > { %v2362_v35 = vadd.f32 %v996_v15, %v948_v5  ;;  %v2364_v3 = vadd.f32 %v997_v16, %v949_v28 }
 0x206   : > { %v868_v51 = vpop.permute.xlu1 %867 }
 0x207   : > { %v886_v25 = vmul.f32 %v868_v51, %v1791_v8  ;;  %v1559_v8 = vld [vmem:[%s2504_s4] sm:$0xff] }
 0x208   : > { %1099 = vperm.xlu1 %1531, %v1559_v8  }
 0x20b   : > { %v916_v6 = vpop.permute.xlu1 %915 }
 0x20c   : > { %v934_v42 = vmul.f32 %v916_v6, %v2248_v1  ;;  %v935_v20 = vmul.f32 %v916_v6, %v2250_v33  ;;  %v1561_v1 = vld [vmem:[%s2504_s4 + $0x10] sm:$0xff]  ;;  %v1562_v33 = vld [vmem:[%s2504_s4 + $0x20] sm:$0xff] }
 0x20d   : > { %1107 = vperm.xlu1 %1531, %v1561_v1  }
 0x20e   : > { %v950_v27 = vadd.f32 %v934_v42, %v886_v25 }
 0x20f   : > { %v920_v34 = vpop.permute.xlu1 %919 }
 0x210   : > { %v936_v19 = vmul.f32 %v920_v34, %v2260_v31  ;;  %v937_v40 = vmul.f32 %v920_v34, %v2262_v14  ;;  %v887_v31 = vmul.f32 %v868_v51, %v1799_v24  ;;  %v1560_v24 = vld [vmem:[%s2504_s4 + $0x8] sm:$0xff] }
 0x211   : > { %1103 = vperm.xlu0 %1532, %v1560_v24  }
 0x212   : > { %v952_v12 = vadd.f32 %v936_v19, %v888_v37  ;;  %v953_v13 = vadd.f32 %v937_v40, %v889_v41  ;;  %v951_v49 = vadd.f32 %v935_v20, %v887_v31 }
 0x214   : > { %v1048_v30 = vpop.permute.xlu1 %1047  ;;  %v2372_v32 = vadd.f32 %v1000_v2, %v952_v12  ;;  %v2374_v11 = vadd.f32 %v1001_v61, %v953_v13 }
 0x215   : > { %1115 = vperm.xlu0 %1532, %v1562_v33  }
 0x219   : > { %v980_v14 = vpop.permute.xlu1 %979 }
 0x21a   : > { %v998_v45 = vmul.f32 %v980_v14, %v2269_v60  ;;  %v999_v18 = vmul.f32 %v980_v14, %v2271_v46  ;;  %v1563_v60 = vld [vmem:[%s2504_s4 + $0x18] sm:$0xff]  ;;  %v2549_v46 = vld [vmem:[#allocation4_spill] sm:$0xff] }
 0x21b   : > { %1111 = vperm.xlu1 %1531, %v1563_v60   ;;  %1123 = vperm.xlu0 %1532, %v2549_v46  }
 0x21c   : > { %v2382_v0 = vadd.f32 %v998_v45, %v950_v27  ;;  %v2384_v17 = vadd.f32 %v999_v18, %v951_v49  ;;  %v1060_v18 = vpop.permute.xlu0 %1059 }
 0x21f   : > { %1119 = vperm.xlu1 %1531, %v1564_v39  }
 0x223   : > { %1127 = vperm.xlu1 %1531, %v2550_v43   ;;  %v1557_v43 = vld [vmem:[%s2503_s3 + $0x10] sm:$0xff]  }
 0x292   : > { %v803_v59 = vpop.f32.mrb[0].mxu1 }
 0x293   : > { %v1018_v10 = vadd.f32 %v2310_v29, %v803_v59  ;;  %v805_v4 = vpop.f32.mrb[1].mxu1  ;;  %v1558_v59 = vld [vmem:[%s2503_s3 + $0x18] sm:$0xff]  }
 0x294   : > { %v1019_v57 = vadd.f32 %v2312_v36, %v805_v4  ;;  %v807_v63 = vpop.f32.mrb[2].mxu1 }
 0x295   : > { %v1020_v47 = vadd.f32 %v2314_v55, %v807_v63  ;;  %v809_v21 = vpop.f32.mrb[3].mxu1  ;;  %v1066_v26 = vadd.f32 %v2346_v50, %v1018_v10 }
 0x296   : > { %v1021_v44 = vadd.f32 %v2316_v56, %v809_v21  ;;  %v1067_v5 = vadd.f32 %v2346_v50, %v1019_v57  ;;  %v1104_v57 = vpop.permute.xlu0 %1103 }
 0x297   : > { %v1068_v23 = vadd.f32 %v2352_v48, %v1020_v47 }
 0x298   : > { %v1069_v28 = vadd.f32 %v2352_v48, %v1021_v44  ;;  %v1052_v48 = vpop.permute.xlu1 %1051 }
 0x299   : > { %v1090_v15 = vpack.c.bf16 %v1068_v23, %v1066_v26 }
 0x29a   : > { %v813_v16 = vpop.f32.mrb[4].mxu1  ;;  %v1091_v29 = vpack.c.bf16 %v1069_v28, %v1067_v5 }
 0x29b   : > { %v1022_v51 = vadd.f32 %v2328_v38, %v813_v16  ;;  %v815_v36 = vpop.f32.mrb[5].mxu1 }
 0x29c   : > { %v1023_v6 = vadd.f32 %v2330_v62, %v815_v36  ;;  %v817_v55 = vpop.f32.mrb[6].mxu1  ;;  %1162 = vmatprep.subr.bf16.mxu0 %v1091_v29  ;;  %v1056_v42 = vpop.permute.xlu1 %1055 }
 0x29d   : > { %v1024_v56 = vadd.f32 %v2334_v22, %v817_v55  ;;  %v819_v54 = vpop.f32.mrb[7].mxu1  ;;  %1163 = vmatpush1.bf16.msra.mxu0 %v1090_v15  ;;  %v1070_v50 = vadd.f32 %v2338_v58, %v1022_v51 }
 0x29e   : > { %v1025_v34 = vadd.f32 %v2336_v7, %v819_v54  ;;  %v1071_v41 = vadd.f32 %v2338_v58, %v1023_v6 }
 0x29f   : > { %v1072_v37 = vadd.f32 %v1048_v30, %v1024_v56 }
 0x2a0   : > { %v1073_v19 = vadd.f32 %v1048_v30, %v1025_v34 }
 0x2a1   : > { %v1092_v40 = vpack.c.bf16 %v1072_v37, %v1070_v50 }
 0x2a2   : > { %v823_v38 = vpop.f32.mrb[8].mxu1  ;;  %v1093_v2 = vpack.c.bf16 %v1073_v19, %v1071_v41 }
 0x2a3   : > { %v1026_v62 = vadd.f32 %v2348_v53, %v823_v38  ;;  %v825_v61 = vpop.f32.mrb[9].mxu1 }
 0x2a4   : > { %v1027_v12 = vadd.f32 %v2350_v9, %v825_v61  ;;  %v827_v22 = vpop.f32.mrb[10].mxu1  ;;  %1164 = vmatprep.subr.bf16.mxu0 %v1093_v2  ;;  %v1116_v2 = vpop.permute.xlu0 %1115 }
 0x2a5   : > { %v1028_v13 = vadd.f32 %v2362_v35, %v827_v22  ;;  %v829_v7 = vpop.f32.mrb[11].mxu1  ;;  %1165 = vmatpush1.bf16.msra.mxu0 %v1092_v40  ;;  %v1074_v25 = vadd.f32 %v1052_v48, %v1026_v62 }
 0x2a6   : > { %v1029_v20 = vadd.f32 %v2364_v3, %v829_v7  ;;  %v1075_v30 = vadd.f32 %v1052_v48, %v1027_v12  ;;  %v1064_v3 = vpop.permute.xlu1 %1063 }
 0x2a7   : > { %v1076_v58 = vadd.f32 %v1056_v42, %v1028_v13 }
 0x2a8   : > { %v1077_v31 = vadd.f32 %v1056_v42, %v1029_v20 }
 0x2a9   : > { %v1094_v14 = vpack.c.bf16 %v1076_v58, %v1074_v25 }
 0x2aa   : > { %v833_v27 = vpop.f32.mrb[12].mxu1  ;;  %v1095_v49 = vpack.c.bf16 %v1077_v31, %v1075_v30  ;;  %v1100_v10 = vpop.permute.xlu1 %1099 }
 0x2ab   : > { %v1030_v53 = vadd.f32 %v2382_v0, %v833_v27  ;;  %v835_v45 = vpop.f32.mrb[13].mxu1  ;;  %v1124_v27 = vpop.permute.xlu0 %1123 }
 0x2ac   : > { %v1031_v9 = vadd.f32 %v2384_v17, %v835_v45  ;;  %v837_v52 = vpop.f32.mrb[14].mxu1  ;;  %1166 = vmatprep.subr.bf16.mxu0 %v1095_v49  ;;  %v1555_v17 = vld [vmem:[%s2503_s3] sm:$0xff]  }
 0x2ad   : > { %v1032_v35 = vadd.f32 %v2372_v32, %v837_v52  ;;  %v839_v8 = vpop.f32.mrb[15].mxu1  ;;  %1167 = vmatpush1.bf16.msra.mxu0 %v1094_v14  ;;  %v1078_v1 = vadd.f32 %v1060_v18, %v1030_v53  ;;  %v2551_v32 = vmov 0  }
 0x2ae   : > { %v1033_v24 = vadd.f32 %v2374_v11, %v839_v8  ;;  %v1079_v60 = vadd.f32 %v1060_v18, %v1031_v9  ;;  %v1556_v11 = vld [vmem:[%s2503_s3 + $0x8] sm:$0xff]   ;;  %v1108_v15 = vpop.permute.xlu1 %1107 }
 0x2af   : > { %v1080_v33 = vadd.f32 %v1064_v3, %v1032_v35 }
 0x2b0   : > { %v1081_v46 = vadd.f32 %v1064_v3, %v1033_v24 }
 0x2b1   : > { %v1096_v39 = vpack.c.bf16 %v1080_v33, %v1078_v1 }
 0x2b2   : > { %v1097_v0 = vpack.c.bf16 %v1081_v46, %v1079_v60  ;;  %v1112_v56 = vpop.permute.xlu1 %1111 }
 0x2b4   : > { %1168 = vmatprep.subr.bf16.mxu0 %v1097_v0 }
 0x2b5   : > { %1169 = vmatpush1.bf16.msra.mxu0 %v1096_v39 }
 0x2b6   : > { %v1120_v22 = vpop.permute.xlu1 %1119 }
 0x2b8   : > { %1466 = vmatmul.mubr.msk.bf16.vlgmr.msra.gmra.mrb[16].mxu0 %vm756_vm1, %v1555_v17 }
 0x2b9   : > { %1204 = vmatprep.mubr.bf16.mxu0 %v2551_v32 }
 0x2ba   : > { %v1128_v9 = vpop.permute.xlu1 %1127 }
 0x2c0   : > { %1467 = vmatmul.mubr.msk.bf16.gmra.mrb[20].mxu0 %vm756_vm1, %v1556_v11 }
 0x2c1   : > { %1214 = vmatprep.mubr.bf16.mxu0 %v2551_v32 }
 0x2c8   : > { %1468 = vmatmul.mubr.msk.bf16.gmra.mrb[24].mxu0 %vm756_vm1, %v1557_v43 }
 0x2c9   : > { %1224 = vmatprep.mubr.bf16.mxu0 %v2551_v32 }
 0x2d0   : > { %1469 = vmatmul.mubr.msk.bf16.gmra.mrb[28].mxu0 %vm756_vm1, %v1558_v59 }
 0x38b   : > { %v1196_v4 = vpop.f32.mrb[16].mxu0 }
 0x38c   : > { %v1197_v63 = vadd.f32 %v1196_v4, %v1100_v10  ;;  %v1198_v47 = vpop.f32.mrb[17].mxu0 }
 0x38d   : > { %v1199_v21 = vadd.f32 %v1198_v47, %v1100_v10  ;;  %v1200_v44 = vpop.f32.mrb[18].mxu0 }
 0x38e   : > { %v1235_v26 = vmax.f32 %v1197_v63, 0.0  ;;  %v1201_v23 = vadd.f32 %v1200_v44, %v1104_v57  ;;  %v1202_v5 = vpop.f32.mrb[19].mxu0 }
 0x38f   : > { %v1236_v28 = vmax.f32 %v1199_v21, 0.0  ;;  %v1203_v16 = vadd.f32 %v1202_v5, %v1104_v57 }
 0x390   : > { %1251 = vst [vmem:[%s2449_s6] sm:$0xff] %v1235_v26  ;;  %v1237_v29 = vmax.f32 %v1201_v23, 0.0 }
 0x391   : > { %1252 = vst [vmem:[%s2449_s6 + $0x8] sm:$0xff] %v1236_v28  ;;  %v1238_v51 = vmax.f32 %v1203_v16, 0.0 }
 0x392   : > { %1253 = vst [vmem:[%s2449_s6 + $0x10] sm:$0xff] %v1237_v29 }
 0x393   : > { %1254 = vst [vmem:[%s2449_s6 + $0x18] sm:$0xff] %v1238_v51  ;;  %v1206_v36 = vpop.f32.mrb[20].mxu0 }
 0x394   : > { %v1207_v6 = vadd.f32 %v1206_v36, %v1108_v15  ;;  %v1208_v55 = vpop.f32.mrb[21].mxu0 }
 0x395   : > { %v1209_v54 = vadd.f32 %v1208_v55, %v1108_v15  ;;  %v1210_v34 = vpop.f32.mrb[22].mxu0 }
 0x396   : > { %v1239_v50 = vmax.f32 %v1207_v6, 0.0  ;;  %v1211_v37 = vadd.f32 %v1210_v34, %v1112_v56  ;;  %v1212_v48 = vpop.f32.mrb[23].mxu0 }
 0x397   : > { %v1240_v41 = vmax.f32 %v1209_v54, 0.0  ;;  %v1213_v19 = vadd.f32 %v1212_v48, %v1112_v56  ;;  %v1289_v46 = vld [vmem:[%s2449_s6] sm:$0xff] (%p1657_p5) }
 0x398   : > { %1255 = vst [vmem:[%s2449_s6 + $0x20] sm:$0xff] %v1239_v50  ;;  %v1241_v40 = vmax.f32 %v1211_v37, 0.0  ;;  %v1291_v39 = vld [vmem:[%s2449_s6 + $0x8] sm:$0xff] (%p1657_p5)  ;;  %1290 = vst [vmem:[%s1276_s26] sm:$0xff] (%p1657_p5), %v1289_v46 }
 0x399   : > { %1256 = vst [vmem:[%s2449_s6 + $0x28] sm:$0xff] %v1240_v41  ;;  %v1242_v38 = vmax.f32 %v1213_v19, 0.0  ;;  %v1293_v0 = vld [vmem:[%s2449_s6 + $0x10] sm:$0xff] (%p1657_p5)  ;;  %1292 = vst [vmem:[%s1276_s26 + $0x8] sm:$0xff] (%p1657_p5), %v1291_v39 }
 0x39a   : > { %1257 = vst [vmem:[%s2449_s6 + $0x30] sm:$0xff] %v1241_v40  ;;  %v1295_v17 = vld [vmem:[%s2449_s6 + $0x18] sm:$0xff] (%p1657_p5)  ;;  %1294 = vst [vmem:[%s1276_s26 + $0x20] sm:$0xff] (%p1657_p5), %v1293_v0 }
 0x39b   : > { %1258 = vst [vmem:[%s2449_s6 + $0x38] sm:$0xff] %v1242_v38  ;;  %v1216_v62 = vpop.f32.mrb[24].mxu0  ;;  %1296 = vst [vmem:[%s1276_s26 + $0x28] sm:$0xff] (%p1657_p5), %v1295_v17 }
 0x39c   : > { %v1218_v61 = vpop.f32.mrb[25].mxu0  ;;  %v1217_v12 = vadd.f32 %v1216_v62, %v1116_v2 }
 0x39d   : > { %v1220_v13 = vpop.f32.mrb[26].mxu0  ;;  %v1219_v7 = vadd.f32 %v1218_v61, %v1116_v2 }
 0x39e   : > { %v1221_v42 = vadd.f32 %v1220_v13, %v1120_v22  ;;  %v1222_v20 = vpop.f32.mrb[27].mxu0  ;;  %v1243_v25 = vmax.f32 %v1217_v12, 0.0 }
 0x39f   : > { %v1223_v58 = vadd.f32 %v1222_v20, %v1120_v22  ;;  %v1244_v30 = vmax.f32 %v1219_v7, 0.0  ;;  %v1297_v32 = vld [vmem:[%s2449_s6 + $0x20] sm:$0xff] (%p1657_p5) }
 0x3a0   : > { %v1245_v31 = vmax.f32 %v1221_v42, 0.0  ;;  %1259 = vst [vmem:[%s2449_s6 + $0x40] sm:$0xff] %v1243_v25  ;;  %v1299_v11 = vld [vmem:[%s2449_s6 + $0x28] sm:$0xff] (%p1657_p5)  ;;  %1298 = vst [vmem:[%s1276_s26 + $0x40] sm:$0xff] (%p1657_p5), %v1297_v32 }
 0x3a1   : > { %v1246_v14 = vmax.f32 %v1223_v58, 0.0  ;;  %1260 = vst [vmem:[%s2449_s6 + $0x48] sm:$0xff] %v1244_v30  ;;  %1300 = vst [vmem:[%s1276_s26 + $0x48] sm:$0xff] (%p1657_p5), %v1299_v11  ;;  %v1301_v43 = vld [vmem:[%s2449_s6 + $0x30] sm:$0xff] (%p1657_p5) }
 0x3a2   : > { %1261 = vst [vmem:[%s2449_s6 + $0x50] sm:$0xff] %v1245_v31  ;;  %v1303_v59 = vld [vmem:[%s2449_s6 + $0x38] sm:$0xff] (%p1657_p5)  ;;  %1302 = vst [vmem:[%s1276_s26 + $0x60] sm:$0xff] (%p1657_p5), %v1301_v43 }
 0x3a3   : > { %1262 = vst [vmem:[%s2449_s6 + $0x58] sm:$0xff] %v1246_v14  ;;  %v1226_v49 = vpop.f32.mrb[28].mxu0  ;;  %1304 = vst [vmem:[%s1276_s26 + $0x68] sm:$0xff] (%p1657_p5), %v1303_v59 }
 0x3a4   : > { %v1227_v53 = vadd.f32 %v1226_v49, %v1124_v27  ;;  %v1228_v45 = vpop.f32.mrb[29].mxu0 }
 0x3a5   : > { %v1229_v18 = vadd.f32 %v1228_v45, %v1124_v27  ;;  %v1230_v52 = vpop.f32.mrb[30].mxu0  ;;  %1273 = sbr.rel (!%p1657_p5) target bundleno = 948 (0x3b4), region = 82 }
 0x3a6   : > { %v1247_v35 = vmax.f32 %v1227_v53, 0.0  ;;  %v1231_v8 = vadd.f32 %v1230_v52, %v1128_v9  ;;  %v1232_v3 = vpop.f32.mrb[31].mxu0 }
 0x3a7   : > { %v1248_v24 = vmax.f32 %v1229_v18, 0.0  ;;  %v1233_v1 = vadd.f32 %v1232_v3, %v1128_v9  ;;  %v1305_v10 = vld [vmem:[%s2449_s6 + $0x40] sm:$0xff] (%p1657_p5) }
 0x3a8   : > { %1263 = vst [vmem:[%s2449_s6 + $0x60] sm:$0xff] %v1247_v35  ;;  %v1249_v33 = vmax.f32 %v1231_v8, 0.0  ;;  %1306 = vst [vmem:[%s1276_s26 + $0x80] sm:$0xff] (%p1657_p5), %v1305_v10  ;;  %v1307_v4 = vld [vmem:[%s2449_s6 + $0x48] sm:$0xff] (%p1657_p5) }
 0x3a9   : > { %1264 = vst [vmem:[%s2449_s6 + $0x68] sm:$0xff] %v1248_v24  ;;  %v1250_v60 = vmax.f32 %v1233_v1, 0.0  ;;  %v1309_v57 = vld [vmem:[%s2449_s6 + $0x50] sm:$0xff] (%p1657_p5)  ;;  %1308 = vst [vmem:[%s1276_s26 + $0x88] sm:$0xff] (%p1657_p5), %v1307_v4 }
 0x3aa   : > { %1265 = vst [vmem:[%s2449_s6 + $0x70] sm:$0xff] %v1249_v33  ;;  %v1311_v63 = vld [vmem:[%s2449_s6 + $0x58] sm:$0xff] (%p1657_p5)  ;;  %1310 = vst [vmem:[%s1276_s26 + $0xa0] sm:$0xff] (%p1657_p5), %v1309_v57 }
 0x3ab   : > { %1266 = vst [vmem:[%s2449_s6 + $0x78] sm:$0xff] %v1250_v60  ;;  %1312 = vst [vmem:[%s1276_s26 + $0xa8] sm:$0xff] (%p1657_p5), %v1311_v63 }
 0x3af   : > { %v1313_v47 = vld [vmem:[%s2449_s6 + $0x60] sm:$0xff] }
 0x3b0   : > { %v1315_v21 = vld [vmem:[%s2449_s6 + $0x68] sm:$0xff]  ;;  %1314 = vst [vmem:[%s1276_s26 + $0xc0] sm:$0xff] %v1313_v47 }
 0x3b1   : > { %v1317_v44 = vld [vmem:[%s2449_s6 + $0x70] sm:$0xff]  ;;  %1316 = vst [vmem:[%s1276_s26 + $0xc8] sm:$0xff] %v1315_v21 }
 0x3b2   : > { %1318 = vst [vmem:[%s1276_s26 + $0xe0] sm:$0xff] %v1317_v44  ;;  %v1319_v26 = vld [vmem:[%s2449_s6 + $0x78] sm:$0xff] }
 0x3b3   : > { %1320 = vst [vmem:[%s1276_s26 + $0xe8] sm:$0xff] %v1319_v26 }
 0x3b4 PF: > { %p12_p10 = scmp.ge.s32.totalorder %s1644_s22, 4   ;;  %s2552_s18 = smov %s1583_s19 }
 0x3b5   : > { %s2553_s19 = smov %s1655_s25  ;;  %s2554_s20 = smov %s1644_s22 }
 0x3b6   :  { %14 = sbr.rel (!%p12_p10) target bundleno = 2 (0x2), region = 136 }

</bundles_post_ra>
